<compile_context>
chip_gen: v5e
topology: v5e:2x2
jax: 0.10.0
libtpu: 0.0.40
codegen_flags: <defaults>
</compile_context>

<pallas_src>
import functools
import math

import jax
import jax.numpy as jnp
from jax.experimental import pallas as pl
from jax.experimental.pallas import tpu as pltpu


def _round_up(x, m):
    return (x + m - 1) // m * m


def _vmem_capacity_bytes():
    try:
        return int(pltpu.get_tpu_info().vmem_capacity_bytes)
    except Exception:
        return 64 << 20   # v7x per-TC physical VMEM; safe lower bound everywhere


def weight_standardization(weight, norm=None, eps=1e-6):
    """JAX port of weight_standarzation(): standardize over dim=1 of (H, I)."""
    mean = jnp.mean(weight, axis=1, keepdims=True)
    w = weight - mean
    std = jnp.sqrt(jnp.var(weight, axis=1, keepdims=True, ddof=1) + eps)
    if norm is not None:
        std = std * norm
    return w / std


def prepare_bert_output_weight(weight, *, ws=False, norm_factor=None,
                               ws_affine=None, matmul_dtype=jnp.bfloat16):
    """One-time weight prep: WS -> transpose (I, H) -> ws_affine fold -> K pad.

    Cache the result and pass it to bert_output(..., prepped_weight=...) so the
    full-weight HBM passes (transpose/WS/pad) are not repeated every call.
    """
    H, I = weight.shape
    w = weight.astype(jnp.float32)
    if ws:
        w = weight_standardization(w, norm=norm_factor)
    wt = w.T                                           # (I, H)
    if ws_affine is not None:
        # ws_affine * (x @ W^T) + b  ==  x @ (W^T * ws_affine) + b
        wt = wt * ws_affine.astype(jnp.float32)[None, :]
    wt = wt.astype(matmul_dtype if matmul_dtype is not None else weight.dtype)
    I_pad = _round_up(I, 128)
    if I_pad != I:
        wt = jnp.pad(wt, ((0, I_pad - I), (0, 0)))
    return wt


def bert_output_kernel(
    x_ref,          # (tm, tk)  hidden_states tile
    w_ref,          # (tk, H)   weight tile (already (I, H))
    b_ref,          # (1, H)    bias
    res_ref,        # (tm, H)   residual (input_tensor) tile
    gamma_ref,      # (1, H)    LayerNorm gamma
    beta_ref,       # (1, H)    LayerNorm beta
    out_ref,        # (tm, H)   output tile
    acc_ref,        # (tm, H)   f32 accumulator scratch
    *, eps, prenorm,
):
    k = pl.program_id(1)

    prod = jnp.dot(x_ref[...], w_ref[...], preferred_element_type=jnp.float32)

    @pl.when(k == 0)
    def _():
        acc_ref[...] = prod          # direct assign: no zero-init store/reload

    @pl.when(k > 0)
    def _():
        acc_ref[...] += prod

    @pl.when(k == pl.num_programs(1) - 1)
    def _():
        y = acc_ref[...] + b_ref[...].astype(jnp.float32)
        # TODO(synk): training-mode dropout not applied (inference identity).
        y = y + res_ref[...].astype(jnp.float32)
        if not prenorm:
            # One-pass LayerNorm: var = E[y^2] - mu^2, gamma folded into scale.
            mu = jnp.mean(y, axis=-1, keepdims=True)
            ms = jnp.mean(y * y, axis=-1, keepdims=True)
            var = ms - mu * mu
            scale = jax.lax.rsqrt(var + eps) * gamma_ref[...].astype(jnp.float32)
            shift = beta_ref[...].astype(jnp.float32) - mu * scale
            y = y * scale + shift
        out_ref[...] = y.astype(out_ref.dtype)


def bert_output(
    hidden_states,            # (..., intermediate_size)
    input_tensor,             # (..., hidden_size)  residual input
    weight=None,              # (hidden_size, intermediate_size)  PyTorch layout
    bias=None,                # (hidden_size,)
    gamma=None,               # (hidden_size,)  LayerNorm weight
    beta=None,                # (hidden_size,)  LayerNorm bias
    *,
    prenorm=False,
    ws=False,                 # weight standardization (ln_after_ffn1 WS modes)
    norm_factor=None,         # sqrt(intermediate_size) for ln_after_ffn1 in (8,10,..)
    ws_affine=None,           # (hidden_size,) for ln_after_ffn1 in (13, 14)
    eps=1e-5,                 # BertLayerNorm eps in this module is 1e-05
    tm=512,                   # row tile target (auto-adjusted)
    tk=1024,                  # reduction tile target (auto-adjusted)
    matmul_dtype=jnp.bfloat16,  # dtype for MXU operands; None = keep input dtype
    prepped_weight=None,      # output of prepare_bert_output_weight (cached)
):
    H = input_tensor.shape[-1]
    I = hidden_states.shape[-1]
    orig_out_shape = input_tensor.shape
    out_dtype = input_tensor.dtype

    # ---- weight prep (done once if the caller caches prepped_weight) ----
    if prepped_weight is None:
        prepped_weight = prepare_bert_output_weight(
            weight, ws=ws, norm_factor=norm_factor, ws_affine=ws_affine,
            matmul_dtype=matmul_dtype)
    wt = prepped_weight                                  # (I_pad, H)
    I_pad = wt.shape[0]
    assert wt.shape == (_round_up(I, 128), H), "prepped weight shape mismatch"

    x = hidden_states.reshape(-1, I)
    res = input_tensor.reshape(-1, H)
    N = x.shape[0]

    if matmul_dtype is not None and x.dtype != matmul_dtype:
        x = x.astype(matmul_dtype)
    if wt.dtype != x.dtype:
        wt = wt.astype(x.dtype)

    if gamma is None:
        gamma = jnp.ones((H,), jnp.float32)
    if beta is None:
        beta = jnp.zeros((H,), jnp.float32)

    # ---- tile selection -------------------------------------------------
    n_rows = _round_up(max(N, 1), 8)
    tm = min(max(tm, 8), n_rows)
    if tm >= 256:
        tm = tm // 256 * 256                             # MXU-friendly multiple
    # Megacore: if there is enough work, keep >= 2 row tiles for v7x's 2 TCs.
    if n_rows >= 512 and _round_up(n_rows, tm) // tm < 2:
        tm = max(256, _round_up((n_rows + 1) // 2, 256))

    tk = min(max(tk, 128), I_pad)
    tk = tk // 128 * 128
    while I_pad % tk:
        tk -= 128

    xb = jnp.dtype(x.dtype).itemsize
    wb = jnp.dtype(wt.dtype).itemsize
    rb = jnp.dtype(res.dtype).itemsize
    ob = jnp.dtype(out_dtype).itemsize

    def _vmem_need(tm_, tk_, wbuf_):
        return (tm_ * H * 4                      # f32 accumulator scratch
                + 2 * tm_ * tk_ * xb             # x double buffer
                + wbuf_ * tk_ * H * wb           # weight buffers
                + 2 * tm_ * H * rb               # residual double buffer
                + 2 * tm_ * H * ob               # output double buffer
                + 8 * H * 4)                     # bias/gamma/beta

    vmem_cap = _vmem_capacity_bytes()
    budget = int(0.70 * vmem_cap)
    # Shrink tiles until they fit the per-generation VMEM budget.
    while _vmem_need(tm, tk, 2) > budget:
        if tk > 512 and tk % 2 == 0 and I_pad % (tk // 2) == 0:
            tk //= 2
        elif tm > 256:
            tm = max(256, tm // 2)
            if tm >= 256:
                tm = tm // 256 * 256
        else:
            break

    N_pad = _round_up(n_rows, tm)
    grid_k = I_pad // tk

    # Deeper weight prefetch only if the k loop is long enough and VMEM allows.
    wbuf = 3 if (grid_k >= 3 and _vmem_need(tm, tk, 3) <= budget) else 2
    vmem_limit = int(min(vmem_cap, max(_vmem_need(tm, tk, wbuf) + (4 << 20),
                                       32 << 20)))

    # ---- pad activations only when actually unaligned -------------------
    # TODO(synk): for very large ragged N/I, mask the tail tile in-kernel
    #             instead of a full-copy pad.
    if I_pad != I:
        x = jnp.pad(x, ((0, 0), (0, I_pad - I)))
    if N_pad != N:
        x = jnp.pad(x, ((0, N_pad - N), (0, 0)))
        res = jnp.pad(res, ((0, N_pad - N), (0, 0)))

    kernel = functools.partial(bert_output_kernel, eps=eps, prenorm=prenorm)

    w_index_map = lambda i, k: (k, 0)
    w_spec = pl.BlockSpec((tk, H), w_index_map)
    if wbuf > 2:
        try:
            w_spec = pl.BlockSpec((tk, H), w_index_map,
                                  pipeline_mode=pl.Buffered(wbuf))
        except TypeError:
            w_spec = pl.BlockSpec((tk, H), w_index_map)

    out = pl.pallas_call(
        kernel,
        out_shape=jax.ShapeDtypeStruct((N_pad, H), out_dtype),
        grid_spec=pltpu.PrefetchScalarGridSpec(
            num_scalar_prefetch=0,
            grid=(N_pad // tm, grid_k),
            in_specs=[
                pl.BlockSpec((tm, tk), lambda i, k: (i, k)),   # x
                w_spec,                                        # weight (I, H)
                pl.BlockSpec((1, H), lambda i, k: (0, 0)),     # bias
                pl.BlockSpec((tm, H), lambda i, k: (i, 0)),    # residual
                pl.BlockSpec((1, H), lambda i, k: (0, 0)),     # gamma
                pl.BlockSpec((1, H), lambda i, k: (0, 0)),     # beta
            ],
            out_specs=pl.BlockSpec((tm, H), lambda i, k: (i, 0)),
            scratch_shapes=[pltpu.VMEM((tm, H), jnp.float32)],
        ),
        compiler_params=pltpu.CompilerParams(
            dimension_semantics=("parallel", "arbitrary"),
            vmem_limit_bytes=vmem_limit,
        ),
    )(x, wt, bias.reshape(1, H), res, gamma.reshape(1, H), beta.reshape(1, H))

    return out[:N].reshape(orig_out_shape)


def _reference(hidden_states, input_tensor, weight, bias, gamma, beta, *,
               prenorm=False, ws=False, norm_factor=None, ws_affine=None,
               eps=1e-5):
    """Pure-JAX reference of BertOutput.forward (inference)."""
    w = weight
    if ws:
        w = weight_standardization(w.astype(jnp.float32), norm=norm_factor)
        w = w.astype(weight.dtype)
    y = jnp.einsum("...i,hi->...h", hidden_states, w)
    if ws_affine is not None:
        y = ws_affine * y
    y = y + bias
    y = y + input_tensor                     # dropout = identity (inference)
    if not prenorm:
        mu = jnp.mean(y, axis=-1, keepdims=True)
        var = jnp.mean((y - mu) ** 2, axis=-1, keepdims=True)
        y = (y - mu) / jnp.sqrt(var + eps)
        y = y * gamma + beta
    return y


if __name__ == "__main__":
    # Small config consistent with the module: intermediate_size = 4 * hidden_size.
    batch, seq = 2, 64
    hidden_size = 128
    intermediate_size = 512

    key = jax.random.PRNGKey(0)
    k1, k2, k3, k4, k5 = jax.random.split(key, 5)

    hidden_states = jax.random.normal(k1, (batch, seq, intermediate_size), jnp.float32)
    input_tensor = jax.random.normal(k2, (batch, seq, hidden_size), jnp.float32)
    weight = (0.02 * jax.random.normal(k3, (hidden_size, intermediate_size))).astype(jnp.float32)
    bias = (0.02 * jax.random.normal(k4, (hidden_size,))).astype(jnp.float32)
    gamma = jnp.ones((hidden_size,), jnp.float32)
    beta = jnp.zeros((hidden_size,), jnp.float32)
    ws_aff = 1.0 + 0.1 * jax.random.normal(k5, (hidden_size,), jnp.float32)

    # tm/tk chosen small here so the toy shapes still exercise multiple row
    # tiles and multiple reduction steps; production defaults are tm=512, tk=1024.
    common = dict(tm=64, tk=256)

    # 1) default post-norm path (bf16 MXU operands, f32 accum/LayerNorm)
    out = bert_output(hidden_states, input_tensor, weight, bias, gamma, beta,
                      prenorm=False, **common)
    out = jax.block_until_ready(out)
    ref = _reference(hidden_states, input_tensor, weight, bias, gamma, beta,
                     prenorm=False)
    assert out.shape == (batch, seq, hidden_size)
    assert jnp.allclose(out, ref, atol=2e-2, rtol=2e-2), "post-norm mismatch"

    # 2) prenorm path (no LayerNorm, plain residual return)
    out_pre = bert_output(hidden_states, input_tensor, weight, bias, gamma, beta,
                          prenorm=True, **common)
    out_pre = jax.block_until_ready(out_pre)
    ref_pre = _reference(hidden_states, input_tensor, weight, bias, gamma, beta,
                         prenorm=True)
    assert jnp.allclose(out_pre, ref_pre, atol=2e-2, rtol=2e-2), "prenorm mismatch"

    # 3) weight-standardized + ws_affine path (ln_after_ffn1 in (13, 14)),
    #    demonstrating the cached-weight-prep API.
    nf = math.sqrt(intermediate_size)
    wt_cached = prepare_bert_output_weight(weight, ws=True, norm_factor=nf,
                                           ws_affine=ws_aff)
    out_ws = bert_output(hidden_states, input_tensor, bias=bias, gamma=gamma,
                         beta=beta, prenorm=False, prepped_weight=wt_cached,
                         **common)
    out_ws = jax.block_until_ready(out_ws)
    ref_ws = _reference(hidden_states, input_tensor, weight, bias, gamma, beta,
                        prenorm=False, ws=True, norm_factor=nf, ws_affine=ws_aff)
    assert jnp.allclose(out_ws, ref_ws, atol=2e-2, rtol=2e-2), "WS mismatch"

    print("KERNEL_OK")
</pallas_src>

<mosaic_0001>
module attributes {stable_mosaic.version = 11 : i64} {
  func.func @bert_output_kernel(%arg0: i32, %arg1: i32, %arg2: memref<64x256xbf16, #tpu.memory_space<vmem>>, %arg3: memref<256x128xbf16, #tpu.memory_space<vmem>>, %arg4: memref<1x128xf32, #tpu.memory_space<vmem>>, %arg5: memref<64x128xf32, #tpu.memory_space<vmem>>, %arg6: memref<1x128xf32, #tpu.memory_space<vmem>>, %arg7: memref<1x128xf32, #tpu.memory_space<vmem>>, %arg8: memref<64x128xf32, #tpu.memory_space<vmem>>, %arg9: memref<64x128xf32, #tpu.memory_space<vmem>>) attributes {dimension_semantics = [#tpu.dimension_semantics<parallel>, #tpu.dimension_semantics<arbitrary>], iteration_bounds = array<i64: 2, 2>, scalar_prefetch = 0 : i64, scratch_operands = 1 : i64, tpu.core_type = #tpu.core_type<tc>, window_params = [{transform_indices = @transform_0, window_bounds = array<i64: 64, 256>}, {transform_indices = @transform_1, window_bounds = array<i64: 256, 128>}, {pipeline_mode = #tpu.pipeline_mode<synchronous>, transform_indices = @transform_2, window_bounds = array<i64: 1, 128>}, {transform_indices = @transform_3, window_bounds = array<i64: 64, 128>}, {pipeline_mode = #tpu.pipeline_mode<synchronous>, transform_indices = @transform_4, window_bounds = array<i64: 1, 128>}, {pipeline_mode = #tpu.pipeline_mode<synchronous>, transform_indices = @transform_5, window_bounds = array<i64: 1, 128>}, {transform_indices = @transform_6, window_bounds = array<i64: 64, 128>}]} {
    %c0 = arith.constant 0 : index
    %c0_0 = arith.constant 0 : index
    %0 = vector.load %arg2[%c0, %c0_0] : memref<64x256xbf16, #tpu.memory_space<vmem>>, vector<64x256xbf16>
    %c0_1 = arith.constant 0 : index
    %c0_2 = arith.constant 0 : index
    %1 = vector.load %arg3[%c0_1, %c0_2] : memref<256x128xbf16, #tpu.memory_space<vmem>>, vector<256x128xbf16>
    %cst = arith.constant dense<0.000000e+00> : vector<64x128xf32>
    %2 = tpu.matmul %0, %1, %cst {dimension_numbers = #tpu.dot_dimension_numbers<[1], [0], [0], [1], [0, 0, 1, 1], [], []>} : vector<64x256xbf16>, vector<256x128xbf16>, vector<64x128xf32> -> vector<64x128xf32>
    %c0_i32 = arith.constant 0 : i32
    %3 = arith.cmpi eq, %arg1, %c0_i32 : i32
    %4 = arith.extui %3 : i1 to i32
    %c0_i32_3 = arith.constant 0 : i32
    %5 = arith.cmpi ne, %4, %c0_i32_3 : i32
    scf.if %5 {
      %c0_7 = arith.constant 0 : index
      %c0_8 = arith.constant 0 : index
      %12 = vector.load %arg9[%c0_7, %c0_8] : memref<64x128xf32, #tpu.memory_space<vmem>>, vector<64x128xf32>
      tpu.vector_store %arg9[%c0_7, %c0_8], %2 {strides = array<i32>} : memref<64x128xf32, #tpu.memory_space<vmem>>, vector<64x128xf32>,
    } else {
    }
    %c0_i32_4 = arith.constant 0 : i32
    %6 = arith.cmpi sgt, %arg1, %c0_i32_4 : i32
    %7 = arith.extui %6 : i1 to i32
    %c0_i32_5 = arith.constant 0 : i32
    %8 = arith.cmpi ne, %7, %c0_i32_5 : i32
    scf.if %8 {
      %c0_7 = arith.constant 0 : index
      %c0_8 = arith.constant 0 : index
      %12 = vector.load %arg9[%c0_7, %c0_8] : memref<64x128xf32, #tpu.memory_space<vmem>>, vector<64x128xf32>
      %13 = arith.addf %12, %2 : vector<64x128xf32>
      %c0_9 = arith.constant 0 : index
      %c0_10 = arith.constant 0 : index
      %14 = vector.load %arg9[%c0_9, %c0_10] : memref<64x128xf32, #tpu.memory_space<vmem>>, vector<64x128xf32>
      tpu.vector_store %arg9[%c0_9, %c0_10], %13 {strides = array<i32>} : memref<64x128xf32, #tpu.memory_space<vmem>>, vector<64x128xf32>,
    } else {
    }
    %c1_i32 = arith.constant 1 : i32
    %9 = arith.cmpi eq, %arg1, %c1_i32 : i32
    %10 = arith.extui %9 : i1 to i32
    %c0_i32_6 = arith.constant 0 : i32
    %11 = arith.cmpi ne, %10, %c0_i32_6 : i32
    scf.if %11 {
      %c0_7 = arith.constant 0 : index
      %c0_8 = arith.constant 0 : index
      %12 = vector.load %arg9[%c0_7, %c0_8] : memref<64x128xf32, #tpu.memory_space<vmem>>, vector<64x128xf32>
      %c0_9 = arith.constant 0 : index
      %c0_10 = arith.constant 0 : index
      %13 = vector.load %arg4[%c0_9, %c0_10] : memref<1x128xf32, #tpu.memory_space<vmem>>, vector<1x128xf32>
      %14 = vector.broadcast %13 : vector<1x128xf32> to vector<64x128xf32>
      %15 = arith.addf %12, %14 : vector<64x128xf32>
      %c0_11 = arith.constant 0 : index
      %c0_12 = arith.constant 0 : index
      %16 = vector.load %arg5[%c0_11, %c0_12] : memref<64x128xf32, #tpu.memory_space<vmem>>, vector<64x128xf32>
      %17 = arith.addf %15, %16 : vector<64x128xf32>
      %cst_13 = arith.constant dense<0.000000e+00> : vector<64xf32>
      %18 = vector.multi_reduction <add>, %17, %cst_13 [1] : vector<64x128xf32> to vector<64xf32>
      %19 = vector.shape_cast %18 : vector<64xf32> to vector<64x1xf32>
      %cst_14 = arith.constant 1.280000e+02 : f32
      %20 = vector.broadcast %cst_14 : f32 to vector<64x1xf32>
      %21 = arith.divf %19, %20 : vector<64x1xf32>
      %22 = arith.mulf %17, %17 : vector<64x128xf32>
      %cst_15 = arith.constant dense<0.000000e+00> : vector<64xf32>
      %23 = vector.multi_reduction <add>, %22, %cst_15 [1] : vector<64x128xf32> to vector<64xf32>
      %24 = vector.shape_cast %23 : vector<64xf32> to vector<64x1xf32>
      %cst_16 = arith.constant 1.280000e+02 : f32
      %25 = vector.broadcast %cst_16 : f32 to vector<64x1xf32>
      %26 = arith.divf %24, %25 : vector<64x1xf32>
      %27 = arith.mulf %21, %21 : vector<64x1xf32>
      %28 = arith.subf %26, %27 : vector<64x1xf32>
      %cst_17 = arith.constant 9.99999974E-6 : f32
      %29 = vector.broadcast %cst_17 : f32 to vector<64x1xf32>
      %30 = arith.addf %28, %29 : vector<64x1xf32>
      %31 = math.rsqrt %30 : vector<64x1xf32>
      %c0_18 = arith.constant 0 : index
      %c0_19 = arith.constant 0 : index
      %32 = vector.load %arg6[%c0_18, %c0_19] : memref<1x128xf32, #tpu.memory_space<vmem>>, vector<1x128xf32>
      %33 = vector.broadcast %31 : vector<64x1xf32> to vector<64x128xf32>
      %34 = vector.broadcast %32 : vector<1x128xf32> to vector<64x128xf32>
      %35 = arith.mulf %33, %34 : vector<64x128xf32>
      %c0_20 = arith.constant 0 : index
      %c0_21 = arith.constant 0 : index
      %36 = vector.load %arg7[%c0_20, %c0_21] : memref<1x128xf32, #tpu.memory_space<vmem>>, vector<1x128xf32>
      %37 = vector.broadcast %21 : vector<64x1xf32> to vector<64x128xf32>
      %38 = arith.mulf %37, %35 : vector<64x128xf32>
      %39 = vector.broadcast %36 : vector<1x128xf32> to vector<64x128xf32>
      %40 = arith.subf %39, %38 : vector<64x128xf32>
      %41 = arith.mulf %17, %35 : vector<64x128xf32>
      %42 = arith.addf %41, %40 : vector<64x128xf32>
      %c0_22 = arith.constant 0 : index
      %c0_23 = arith.constant 0 : index
      %43 = vector.load %arg8[%c0_22, %c0_23] : memref<64x128xf32, #tpu.memory_space<vmem>>, vector<64x128xf32>
      tpu.vector_store %arg8[%c0_22, %c0_23], %42 {strides = array<i32>} : memref<64x128xf32, #tpu.memory_space<vmem>>, vector<64x128xf32>,
    } else {
    }
    return
  }
  func.func @transform_0(%arg0: i32, %arg1: i32) -> (i32, i32) {
    %c0_i32 = arith.constant 0 : i32
    return %arg0, %arg1 : i32, i32
  }
  func.func @transform_1(%arg0: i32, %arg1: i32) -> (i32, i32) {
    %c0_i32 = arith.constant 0 : i32
    %c0_i32_0 = arith.constant 0 : i32
    return %arg1, %c0_i32 : i32, i32
  }
  func.func @transform_2(%arg0: i32, %arg1: i32) -> (i32, i32) {
    %c0_i32 = arith.constant 0 : i32
    %c0_i32_0 = arith.constant 0 : i32
    %c0_i32_1 = arith.constant 0 : i32
    return %c0_i32, %c0_i32_0 : i32, i32
  }
  func.func @transform_3(%arg0: i32, %arg1: i32) -> (i32, i32) {
    %c0_i32 = arith.constant 0 : i32
    %c0_i32_0 = arith.constant 0 : i32
    return %arg0, %c0_i32 : i32, i32
  }
  func.func @transform_4(%arg0: i32, %arg1: i32) -> (i32, i32) {
    %c0_i32 = arith.constant 0 : i32
    %c0_i32_0 = arith.constant 0 : i32
    %c0_i32_1 = arith.constant 0 : i32
    return %c0_i32, %c0_i32_0 : i32, i32
  }
  func.func @transform_5(%arg0: i32, %arg1: i32) -> (i32, i32) {
    %c0_i32 = arith.constant 0 : i32
    %c0_i32_0 = arith.constant 0 : i32
    %c0_i32_1 = arith.constant 0 : i32
    return %c0_i32, %c0_i32_0 : i32, i32
  }
  func.func @transform_6(%arg0: i32, %arg1: i32) -> (i32, i32) {
    %c0_i32 = arith.constant 0 : i32
    %c0_i32_0 = arith.constant 0 : i32
    return %arg0, %c0_i32 : i32, i32
  }
}

</mosaic_0001>

<bundles_post_ra>
// kernel: tpu_custom_call.1
= control target key start
LH: loop header
LB: loop body
LE: loop exit
PB: predicated region body
PF: predicated region fallthrough
CT: control target
= control target key end

     0   :  { %s2224_s0 = inlined_call_operand.hbm [shape: bf16[128,512], index: 0, kind: input, shape index: {}]   ;;  %s2225_s1 = inlined_call_operand.hbm [shape: bf16[512,128], index: 1, kind: input, shape index: {}]   ;;  %s2226_s2 = inlined_call_operand.vmem [shape: f32[1,128], index: 2, kind: input, shape index: {}]   ;;  %s2227_s3 = inlined_call_operand.hbm [shape: f32[128,128], index: 3, kind: input, shape index: {}]   ;;  %s2228_s4 = inlined_call_operand.vmem [shape: f32[1,128], index: 4, kind: input, shape index: {}]   ;;  %s2229_s5 = inlined_call_operand.vmem [shape: f32[1,128], index: 5, kind: input, shape index: {}]   ;;  %s2230_s6 = inlined_call_operand.hbm [shape: f32[128,128], index: 6, kind: output, shape index: {}]  }
   0x1   :  { %2239 = sst [smem:[#allocation25_spill]] %s2224_s0 }
   0x2   :  { %2240 = sst [smem:[#allocation26_spill]] %s2225_s1 }
   0x3   :  { %2241 = sst [smem:[#allocation27_spill]] %s2228_s4 }
   0x4   :  { %2242 = sst [smem:[#allocation28_spill]] %s2229_s5 }
   0x5   :  { %2243 = sst [smem:[#allocation29_spill]] %s2230_s6 }
   0x6   :  { %11 = vsyncpa [#allocation4], 0 }
   0x7   :  { %13 = vsyncpa [#allocation4 + $0x1], 0 }
   0x8   :  { %14 = vsyncpa [#allocation7], 0 }
   0x9   :  { %16 = vsyncpa [#allocation7 + $0x1], 0 }
   0xa   :  { %17 = vsyncpa [#allocation5], 0 }
   0xb   :  { %19 = vsyncpa [#allocation5 + $0x1], 0  ;;  %s1680_s21 = smov 0   ;;  %s1682_s22 = smov 0  }
   0xc   :  { %s1684_s23 = smov 0   ;;  %s1686_s24 = smov 0  }
   0xd   :  { %s1688_s25 = smov 0   ;;  %s1690_s26 = smov 0  }
   0xe   :  { %s1692_s27 = smov 0   ;;  %s1694_s28 = smov 0  }
   0xf   :  { %s1696_s29 = smov 0   ;;  %s1698_s30 = smov 0  }
  0x10   :  { %s1700_s7 = smov 0   ;;  %s1702_s8 = smov 0  }
  0x11   :  { %s1704_s9 = smov 0   ;;  %s1706_s10 = smov 0  }
  0x12 LB: > { %2244 = sst [smem:[#allocation14_spill]] %s1591_s23  ;;  %s1751_s11 = sadd.s32 4294967295, %s1635_s10   ;;  %s1635_s10 = sphi %s1706_s10, %s25_s10   ;;  %s1631_s9 = sphi %s1704_s9, %s2281_s9   ;;  %s1627_s8 = sphi %s1702_s8, %s2280_s8   ;;  %s1623_s7 = sphi %s1700_s7, %s2279_s7   ;;  %s1619_s30 = sphi %s1698_s30, %s2278_s30   ;;  %s1615_s29 = sphi %s1696_s29, %s2277_s29   ;;  %s1611_s28 = sphi %s1694_s28, %s2287_s28   ;;  %s1607_s27 = sphi %s1692_s27, %s2286_s27   ;;  %s1603_s26 = sphi %s1690_s26, %s2275_s26   ;;  %s1599_s25 = sphi %s1688_s25, %s2285_s25   ;;  %s1595_s24 = sphi %s1686_s24, %s2284_s24   ;;  %s1591_s23 = sphi %s1684_s23, %s2273_s23   ;;  %s1587_s22 = sphi %s1682_s22, %s2283_s22   ;;  %s1583_s21 = sphi %s1680_s21, %s2282_s21  }
  0x13   : > { %2245 = sst [smem:[#allocation15_spill]] %s1603_s26  ;;  %s34_s12 = sadd.s32 1, %s1627_s8 }
  0x14   : > { %2246 = sst [smem:[#allocation16_spill]] %s1615_s29  ;;  %p35_p0 = scmp.ge.s32.totalorder %s34_s12, 2 }
  0x15   : > { %2247 = sst [smem:[#allocation17_spill]] %s1623_s7  ;;  %s37_s13 = sadd.s32 1, %s1631_s9 }
  0x16   : > { %2248 = sst [smem:[#allocation18_spill]] %s1627_s8  ;;  %p54_p1 = scmp.eq.s32.totalorder %s1635_s10, 0 }
  0x17   : > { %2249 = sst [smem:[#allocation19_spill]] %s1631_s9  ;;  %p60_p2 = scmp.eq.s32.totalorder %s1751_s11, 0 }
  0x18   : > { %s2289_s12 = smov (%p35_p0, %s34_s12), 0  ;;  %s2291_s13 = smov (!%p35_p0, %s37_s13), %s1631_s9 }
  0x19   : > { %2250 = sst [smem:[#allocation20_spill]] %s2289_s12  ;;  %s42_s14 = ssub.s32 %s1627_s8, %s2289_s12 }
  0x1a   : > { %s72_s15 = sadd.s32 1, %s1603_s26  ;;  %p39_p3 = scmp.ge.s32.totalorder %s2291_s13, 2 }
  0x1b   : > { %p70_p4 = scmp.eq.s32.totalorder %s42_s14, 0  ;;  %p79_p5 = scmp.ne.s32.totalorder %s1603_s26, %s1599_s25 }
  0x1c   : > { %p85_p6 = scmp.ne.s32.totalorder %s1599_s25, %s1595_s24  ;;  %s2293_s13 = smov (%p39_p3, %s2291_s13), 0 }
  0x1d   : > { %2251 = sst [smem:[#allocation21_spill]] %s2293_s13  ;;  %s1774_s17 = ssub.s32 %s1631_s9, %s2293_s13 }
  0x1e   : > { %s1770_s16 = scalar_select %p70_p4, %s1603_s26, %s72_s15  }
  0x1f   : > { %p1778_p7 = por %p79_p5, %p54_p1  ;;  %s43_s19 = sor.u32 %s42_s14, %s1774_s17 }
  0x20   : > { %2252 = sst [smem:[#allocation22_spill]] %s1770_s16  ;;  %p1785_p8 = por %p85_p6, %p60_p2 }
  0x21   : > { %p1789_p9 = scmp.eq.s32.totalorder %s43_s19, 0  ;;  %p117_p10 = scmp.eq.s32.totalorder %s1774_s17, 0 }
  0x22   : > { %p1248_p11 = scmp.lt.s32.totalorder %s1635_s10, 4  ;;  %s258_s15 = sand.u32 1, %s1635_s10  }
  0x23   : > { %s260_s13 = sand.u32 1, %s1603_s26   ;;  %s1183_s16 = sshll.u32 %s1627_s8, 7 }
  0x24   : > { %s1067_s12 = sshll.u32 %s260_s13, 7  ;;  %s2256_s1 = sld [smem:[#allocation26_spill]] }
  0x25   : > { %s262_s19 = scalar_lea.vmem [#allocation6], %s1067_s12  ;;  %p1238_p12 = pnand %p1248_p11, %p1778_p7 }
  0x26   : > { %s270_s5 = sshll.u32 %s262_s19, 4  ;;  %p1073_p13 = scmp.ge.s32.totalorder %s1635_s10, 1  ;;  %s271_s5 = int_to_ptr.vmem [resolvable:$true] %s270_s5 }
  0x27   : > { %s1806_s6 = scalar_lea.sflag [#allocation7], %s258_s15  ;;  %s1637_s13 = smov 64  }
  0x28   : > { %s1638_s12 = smov 4   ;;  %p300_p0 = scmp.lt.s32.totalorder %s1635_s10, 5 }
  0x29   : > { %p53_p4 = scmp.ne.s32.totalorder %s1615_s29, %s1611_s28  ;;  %p59_p6 = scmp.ne.s32.totalorder %s1611_s28, %s1607_s27 }
  0x2a   : > { %s267_s7 = scalar_lea.hbm %s2256_s1, %s1183_s16  ;;  %p1810_p3 = pnand %p1073_p13, %p300_p0 }
  0x2b   : > { %s268_s4 = sshll.u32 %s267_s7, 4  ;;  %s46_s7 = sadd.s32 1, %s1615_s29  ;;  %s269_s4 = int_to_ptr.hbm [resolvable:$true] %s268_s4 }
  0x2c   : > { %1240 = dma.hbm_to_vmem [thread:$0]  (!%p1238_p12), %s269_s4, 2048, %s271_s5, %s1806_s6, %s1637_s13, %s1637_s13, %s1638_s12  }
  0x2d   : > { %s1820_s18 = scalar_select %p1789_p9, %s1615_s29, %s46_s7  }
  0x2e   : > { %p1824_p5 = por %p54_p1, %p53_p4  ;;  %s233_s15 = sand.u32 1, %s1615_s29  }
  0x2f   : > { %2258 = sst [smem:[#allocation23_spill]] %s1820_s18  ;;  %s1064_s4 = sshll.u32 %s1627_s8, 1 }
  0x30   : > { %p1834_p7 = por %p60_p2, %p59_p6  ;;  %s1062_s19 = sshll.u32 %s233_s15, 6 }
  0x31   : > { %s1182_s24 = sshll.u32 %s1631_s9, 5  ;;  %s237_s7 = scalar_lea.vmem [#allocation3], %s1062_s19 }
  0x32   : > { %s243_s13 = sadd.s32 %s1182_s24, %s1064_s4  ;;  %s248_s27 = sshll.u32 %s237_s7, 4  ;;  %s249_s27 = int_to_ptr.vmem [resolvable:$true] %s248_s27 }
  0x33   : > { %s1066_s12 = sshll.u32 %s243_s13, 2  ;;  %s2261_s0 = sld [smem:[#allocation25_spill]] }
  0x34   : > { %p1235_p9 = pnand %p1248_p11, %p1824_p5  ;;  %s234_s4 = scalar_lea.sflag [#allocation4], %s233_s15 }
  0x35   : > { %s1639_s24 = smov 256   ;;  %s1640_s19 = smov 128  }
  0x36   : > { %s1641_s13 = smov 8   ;;  %s1059_s7 = sadd.s32 4294967294, %s1635_s10  }
  0x37   : > { %s119_s1 = sadd.s32 1, %s1591_s23  ;;  %p126_p12 = scmp.ne.s32.totalorder %s1591_s23, %s1587_s22 }
  0x38   : > { %s1853_s8 = scalar_select %p117_p10, %s1591_s23, %s119_s1  }
  0x39   : > { %s245_s18 = scalar_lea.hbm %s2261_s0, %s1066_s12  ;;  %p1857_p13 = por %p126_p12, %p54_p1 }
  0x3a   : > { %s246_s29 = sshll.u32 %s245_s18, 4  ;;  %2262 = sst [smem:[#allocation24_spill]] %s1853_s8  ;;  %s247_s29 = int_to_ptr.hbm [resolvable:$true] %s246_s29 }
  0x3b   : > { %1237 = dma.hbm_to_vmem [thread:$0]  (!%p1235_p9), %s247_s29, 1024, %s249_s27, %s234_s4, %s1639_s24, %s1640_s19, %s1641_s13  }
  0x3c   : > { %p132_p0 = scmp.ne.s32.totalorder %s1587_s22, %s1583_s21  ;;  %p198_p4 = scmp.eq.s32.totalorder %s1751_s11, 3 }
  0x3d   : > { %p204_p5 = scmp.eq.s32.totalorder %s1059_s7, 3  ;;  %s282_s14 = sand.u32 1, %s1591_s23  }
  0x3e   : > { %p1866_p6 = por %p132_p0, %p60_p2  ;;  %p1871_p9 = por %p198_p4, %p126_p12 }
  0x3f   : > { %p1875_p1 = por %p204_p5, %p132_p0  ;;  %s1070_s12 = sshll.u32 %s282_s14, 6 }
  0x40   : > { %s1184_s27 = sshll.u32 %s1631_s9, 6  ;;  %s284_s0 = scalar_lea.vmem [#allocation8], %s1070_s12 }
  0x41   : > { %s289_s7 = scalar_lea.hbm %s2227_s3, %s1184_s27  ;;  %s292_s26 = sshll.u32 %s284_s0, 4  ;;  %s293_s26 = int_to_ptr.vmem [resolvable:$true] %s292_s26 }
  0x42   : > { %s290_s1 = sshll.u32 %s289_s7, 4  ;;  %p1241_p2 = pnand %p1248_p11, %p1857_p13  ;;  %s291_s1 = int_to_ptr.hbm [resolvable:$true] %s290_s1 }
  0x43   : > { %304 = sbr.rel (%p1810_p3) target bundleno = 526 (0x20e), region = 44  ;;  %s306_s14 = sand.u32 (!%p1810_p3), 1, %s1611_s28  }
  0x44   : > { %1243 = dma.hbm_to_vmem [thread:$0]  (!%p1241_p2), %s291_s1, 1024, %s293_s26, %s1806_s6, %s1640_s19, %s1640_s19, %s1641_s13  }
  0x45   : > { %s1074_s9 = sshll.u32 (!%p1810_p3), %s306_s14, 6  ;;  %s307_s8 = scalar_lea.sflag (!%p1810_p3), [#allocation4], %s306_s14 }
  0x46   : > { %s1891_s23 = scalar_lea.vmem (!%p1810_p3), [#allocation3], %s1074_s9 }
  0x48   : > { %1566 = dma.done.wait (%p1834_p7), %s307_s8, 1024  }
  0x49   : > { %1568 = vsyncadd (%p1834_p7), %s307_s8, 4294966272  ;;  %s316_s0 = sand.u32 1, %s1751_s11   ;;  %s318_s26 = sand.u32 1, %s1599_s25  }
  0x4a   : > { %s1075_s6 = sshll.u32 %s318_s26, 7  ;;  %s317_s16 = scalar_lea.sflag [#allocation7], %s316_s0 }
  0x4b   : > { %s1899_s19 = scalar_lea.vmem [#allocation6], %s1075_s6 }
  0x4c   : > { %1570 = dma.done.wait (%p1785_p8), %s317_s16, 2048  }
  0x4d   : > { %1572 = vsyncadd (%p1785_p8), %s317_s16, 4294965248  ;;  %s328_s9 = sand.u32 1, %s1587_s22  }
  0x4e   : > { %s1908_s5 = sshll.u32 %s328_s9, 6 }
  0x4f   : > { %s1911_s13 = scalar_lea.vmem [#allocation8], %s1908_s5 }
  0x50   : > { %1574 = dma.done.wait (%p1866_p6), %s317_s16, 1024  }
  0x51   : > { %1576 = vsyncadd (%p1866_p6), %s317_s16, 4294966272  ;;  %v1200_v0 = vld [vmem:[%s1899_s19 + $0x38] sm:$0xff]  ;;  %v1199_v2 = vld [vmem:[%s1899_s19 + $0x30] sm:$0xff]  ;;  %p1174_p8 = scmp.ne.s32.totalorder %s1619_s30, 0 }
  0x52   : > { %v1208_v1 = vld [vmem:[%s1899_s19 + $0x78] sm:$0xff]  ;;  %551 = vmatpush.bf16.msra.mxu0 %v1200_v0  ;;  %1210 = vmatpush.bf16.msra.mxu2 %v1200_v0  ;;  %v1207_v3 = vld [vmem:[%s1899_s19 + $0x70] sm:$0xff]  ;;  %v1198_v4 = vld [vmem:[%s1899_s19 + $0x28] sm:$0xff] }
  0x53   : > { %580 = vmatpush.bf16.msra.mxu1 %v1208_v1  ;;  %1218 = vmatpush.bf16.msra.mxu3 %v1208_v1  ;;  %v1206_v5 = vld [vmem:[%s1899_s19 + $0x68] sm:$0xff]  ;;  %v1197_v6 = vld [vmem:[%s1899_s19 + $0x20] sm:$0xff]  ;;  %v1196_v8 = vld [vmem:[%s1899_s19 + $0x18] sm:$0xff] }
  0x54   : > { %v1205_v7 = vld [vmem:[%s1899_s19 + $0x60] sm:$0xff]  ;;  %v1204_v9 = vld [vmem:[%s1899_s19 + $0x58] sm:$0xff]  ;;  %v1195_v10 = vld [vmem:[%s1899_s19 + $0x10] sm:$0xff] }
  0x55   : > { %v1203_v11 = vld [vmem:[%s1899_s19 + $0x50] sm:$0xff]  ;;  %v1194_v12 = vld [vmem:[%s1899_s19 + $0x8] sm:$0xff]  ;;  %v1193_v14 = vld [vmem:[%s1899_s19] sm:$0xff] }
  0x56   : > { %552 = vmatpush.bf16.msra.mxu0 %v1199_v2  ;;  %1211 = vmatpush.bf16.msra.mxu2 %v1199_v2  ;;  %v1202_v13 = vld [vmem:[%s1899_s19 + $0x48] sm:$0xff]  ;;  %v1201_v15 = vld [vmem:[%s1899_s19 + $0x40] sm:$0xff]  ;;  %v1088_v28 = vld [vmem:[%s1891_s23 + $0x10] sm:$0xf] }
  0x57   : > { %581 = vmatpush.bf16.msra.mxu1 %v1207_v3  ;;  %1219 = vmatpush.bf16.msra.mxu3 %v1207_v3  ;;  %v1080_v16 = vld [vmem:[%s1891_s23] sm:$0xf]  ;;  %v1186_v17 = vld [vmem:[%s1891_s23 + $0x4] sm:$0xf0]  ;;  %v1185_v20 = vld [vmem:[%s1891_s23 + $0x4] sm:$0xf] }
  0x58   : > { %v1096_v18 = vld [vmem:[%s1891_s23 + $0x20] sm:$0xf]  ;;  %v1190_v19 = vld [vmem:[%s1891_s23 + $0x24] sm:$0xf0]  ;;  %v1082_v21 = vld [vmem:[%s1891_s23 + $0x8] sm:$0xf0]  ;;  %v1081_v24 = vor.u32 %v1186_v17, %v1080_v16 }
  0x59   : > { %v1189_v22 = vld [vmem:[%s1891_s23 + $0x24] sm:$0xf]  ;;  %v1098_v23 = vld [vmem:[%s1891_s23 + $0x28] sm:$0xf0]  ;;  %v1097_v25 = vor.u32 %v1190_v19, %v1096_v18  ;;  %v1085_v26 = vor.u32 %v1185_v20, %v1082_v21  ;;  %v1188_v29 = vld [vmem:[%s1891_s23 + $0x14] sm:$0xf0] }
  0x5a   : > { %553 = vmatpush.bf16.msra.mxu0 %v1198_v4  ;;  %1212 = vmatpush.bf16.msra.mxu2 %v1198_v4  ;;  %v1101_v27 = vor.u32 %v1189_v22, %v1098_v23  ;;  %v1104_v30 = vld [vmem:[%s1891_s23 + $0x30] sm:$0xf]  ;;  %v1192_v31 = vld [vmem:[%s1891_s23 + $0x34] sm:$0xf0]  ;;  %v1187_v32 = vld [vmem:[%s1891_s23 + $0x14] sm:$0xf]  ;;  %v1089_v36 = vor.u32 %v1188_v29, %v1088_v28 }
  0x5b   : > { %582 = vmatpush.bf16.msra.mxu1 %v1206_v5  ;;  %1220 = vmatpush.bf16.msra.mxu3 %v1206_v5  ;;  %v1090_v33 = vld [vmem:[%s1891_s23 + $0x18] sm:$0xf0]  ;;  %v1191_v34 = vld [vmem:[%s1891_s23 + $0x34] sm:$0xf]  ;;  %v1105_v37 = vor.u32 %v1192_v31, %v1104_v30 }
  0x5c   : > { %v1106_v35 = vld [vmem:[%s1891_s23 + $0x38] sm:$0xf0]  ;;  %v1093_v38 = vor.u32 %v1187_v32, %v1090_v33  ;;  %s1950_s23 = scalar_lea.vmem [#allocation9], %s1908_s5 }
  0x5d   : > { %v1109_v39 = vor.u32 %v1191_v34, %v1106_v35 }
  0x5e   : > { %554 = vmatpush.bf16.msra.mxu0 %v1197_v6  ;;  %1213 = vmatpush.bf16.msra.mxu2 %v1197_v6 }
  0x5f   : > { %583 = vmatpush.bf16.msra.mxu1 %v1205_v7  ;;  %1221 = vmatpush.bf16.msra.mxu3 %v1205_v7 }
  0x62   : > { %555 = vmatpush.bf16.msra.mxu0 %v1196_v8  ;;  %1214 = vmatpush.bf16.msra.mxu2 %v1196_v8 }
  0x63   : > { %584 = vmatpush.bf16.msra.mxu1 %v1204_v9  ;;  %1222 = vmatpush.bf16.msra.mxu3 %v1204_v9 }
  0x66   : > { %556 = vmatpush.bf16.msra.mxu0 %v1195_v10  ;;  %1215 = vmatpush.bf16.msra.mxu2 %v1195_v10 }
  0x67   : > { %585 = vmatpush.bf16.msra.mxu1 %v1203_v11  ;;  %1223 = vmatpush.bf16.msra.mxu3 %v1203_v11 }
  0x6a   : > { %557 = vmatpush.bf16.msra.mxu0 %v1194_v12  ;;  %1216 = vmatpush.bf16.msra.mxu2 %v1194_v12 }
  0x6b   : > { %586 = vmatpush.bf16.msra.mxu1 %v1202_v13  ;;  %1224 = vmatpush.bf16.msra.mxu3 %v1202_v13 }
  0x6e   : > { %558 = vmatpush.bf16.msra.mxu0 %v1193_v14  ;;  %1217 = vmatpush.bf16.msra.mxu2 %v1193_v14 }
  0x6f   : > { %587 = vmatpush.bf16.msra.mxu1 %v1201_v15  ;;  %1225 = vmatpush.bf16.msra.mxu3 %v1201_v15 }
  0x71   : > { %559 = vmatmul.bf16.vlgmr.msra.gmra.mxu0 %v1081_v24  ;;  %569 = vmatmul.bf16.vlgmr.msra.gmra.mxu2 %v1097_v25 }
  0x72   : > { %588 = vmatmul.bf16.vlgmr.msra.gmra.mxu1 %v1085_v26  ;;  %598 = vmatmul.bf16.vlgmr.msra.gmra.mxu3 %v1101_v27 }
  0x81   : > { %564 = vmatmul.bf16.gmra.mxu0 %v1089_v36  ;;  %574 = vmatmul.bf16.gmra.mxu2 %v1105_v37 }
  0x82   : > { %593 = vmatmul.bf16.gmra.mxu1 %v1093_v38  ;;  %603 = vmatmul.bf16.gmra.mxu3 %v1109_v39 }
  0xee   : > { %v560_v40 = vpop.f32.mrf.mxu0 }
  0xef   : > { %v589_v41 = vpop.f32.mrf.mxu1 }
  0xf0   : > { %v590_v42 = vadd.f32 %v589_v41, %v560_v40 }
  0xf4   : > { %v570_v43 = vpop.f32.mrf.mxu2 }
  0xf5   : > { %v599_v44 = vpop.f32.mrf.mxu3 }
  0xf6   : > { %v600_v45 = vadd.f32 %v599_v44, %v570_v43  ;;  %v562_v46 = vpop.f32.mrf.mxu0 }
  0xf7   : > { %v591_v47 = vpop.f32.mrf.mxu1 }
  0xf8   : > { %v592_v48 = vadd.f32 %v591_v47, %v562_v46 }
  0xfc   : > { %v572_v49 = vpop.f32.mrf.mxu2 }
  0xfd   : > { %v601_v50 = vpop.f32.mrf.mxu3 }
  0xfe   : > { %v602_v51 = vadd.f32 %v601_v50, %v572_v49  ;;  %v565_v52 = vpop.f32.mrf.mxu0 }
  0xff   : > { %v594_v53 = vpop.f32.mrf.mxu1 }
 0x100   : > { %v595_v54 = vadd.f32 %v594_v53, %v565_v52 }
 0x104   : > { %v575_v55 = vpop.f32.mrf.mxu2 }
 0x105   : > { %v604_v56 = vpop.f32.mrf.mxu3 }
 0x106   : > { %v605_v57 = vadd.f32 %v604_v56, %v575_v55  ;;  %v567_v58 = vpop.f32.mrf.mxu0 }
 0x107   : > { %v596_v59 = vpop.f32.mrf.mxu1 }
 0x108   : > { %v597_v60 = vadd.f32 %v596_v59, %v567_v58 }
 0x10a   : > { %612 = sbr.rel (%p1174_p8) target bundleno = 279 (0x117), region = 60 }
 0x10c   : > { %v577_v61 = vpop.f32.mrf.mxu2 }
 0x10d   : > { %v606_v62 = vpop.f32.mrf.mxu3 }
 0x10e   : > { %v607_v63 = vadd.f32 %v606_v62, %v577_v61 }
 0x10f   : > { %613 = vst [vmem:[#allocation2 + $0x30] sm:$0xff] %v590_v42 }
 0x110   : > { %614 = vst [vmem:[#allocation2] sm:$0xff] %v592_v48 }
 0x111   : > { %615 = vst [vmem:[#allocation2 + $0x18] sm:$0xff] %v595_v54 }
 0x112   : > { %616 = vst [vmem:[#allocation2 + $0x10] sm:$0xff] %v597_v60 }
 0x113   : > { %617 = vst [vmem:[#allocation2 + $0x8] sm:$0xff] %v600_v45 }
 0x114   : > { %618 = vst [vmem:[#allocation2 + $0x20] sm:$0xff] %v602_v51 }
 0x115   : > { %619 = vst [vmem:[#allocation2 + $0x28] sm:$0xff] %v605_v57 }
 0x116   : > { %620 = vst [vmem:[#allocation2 + $0x38] sm:$0xff] %v607_v63 }
 0x117 PF: > { %p1175_p10 = scmp.le.s32.totalorder %s1619_s30, 0 }
 0x119   : > { %624 = sbr.rel (%p1175_p10) target bundleno = 297 (0x129), region = 64 }
 0x11e   : > { %v625_v0 = vld [vmem:[#allocation2 + $0x30] sm:$0xff]  ;;  %v626_v1 = vld [vmem:[#allocation2] sm:$0xff]  ;;  %v627_v2 = vld [vmem:[#allocation2 + $0x18] sm:$0xff] }
 0x11f   : > { %v633_v3 = vadd.f32 %v625_v0, %v590_v42  ;;  %v634_v4 = vadd.f32 %v626_v1, %v592_v48  ;;  %v635_v5 = vadd.f32 %v627_v2, %v595_v54  ;;  %v628_v6 = vld [vmem:[#allocation2 + $0x10] sm:$0xff]  ;;  %v629_v7 = vld [vmem:[#allocation2 + $0x8] sm:$0xff]  ;;  %v630_v8 = vld [vmem:[#allocation2 + $0x20] sm:$0xff] }
 0x120   : > { %v636_v9 = vadd.f32 %v628_v6, %v597_v60  ;;  %v631_v10 = vld [vmem:[#allocation2 + $0x28] sm:$0xff]  ;;  %v637_v11 = vadd.f32 %v629_v7, %v600_v45  ;;  %v632_v12 = vld [vmem:[#allocation2 + $0x38] sm:$0xff]  ;;  %v638_v13 = vadd.f32 %v630_v8, %v602_v51 }
 0x121   : > { %641 = vst [vmem:[#allocation2 + $0x30] sm:$0xff] %v633_v3  ;;  %v639_v14 = vadd.f32 %v631_v10, %v605_v57  ;;  %v640_v15 = vadd.f32 %v632_v12, %v607_v63 }
 0x122   : > { %642 = vst [vmem:[#allocation2] sm:$0xff] %v634_v4 }
 0x123   : > { %643 = vst [vmem:[#allocation2 + $0x18] sm:$0xff] %v635_v5 }
 0x124   : > { %644 = vst [vmem:[#allocation2 + $0x10] sm:$0xff] %v636_v9 }
 0x125   : > { %645 = vst [vmem:[#allocation2 + $0x8] sm:$0xff] %v637_v11 }
 0x126   : > { %646 = vst [vmem:[#allocation2 + $0x20] sm:$0xff] %v638_v13 }
 0x127   : > { %647 = vst [vmem:[#allocation2 + $0x28] sm:$0xff] %v639_v14 }
 0x128   : > { %648 = vst [vmem:[#allocation2 + $0x38] sm:$0xff] %v640_v15 }
 0x129 PF: > { %p1176_p11 = scmp.ne.s32.totalorder %s1619_s30, 1 }
 0x12a   : > { %s2267_s18 = sld [smem:[#allocation27_spill]] (!%p1176_p11) }
 0x12b   : > { %652 = sbr.rel (%p1176_p11) target bundleno = 504 (0x1f8), region = 68  ;;  %s2268_s27 = sld [smem:[#allocation28_spill]] (!%p1176_p11) }
 0x130   : > { %v657_v16 = vld [vmem:[#allocation2 + $0x8] sm:$0xff]  ;;  %v1370_v17 = vld [vmem:[%s2226_s2] ss:$0 sm:$0xff]  ;;  %v655_v19 = vld [vmem:[#allocation2 + $0x18] sm:$0xff]  ;;  %v1642_v57 = vmov 128.0  }
 0x131   : > { %v677_v18 = vld [vmem:[%s1911_s13 + $0x20] sm:$0xff]  ;;  %v675_v20 = vld [vmem:[%s1911_s13 + $0x10] sm:$0xff]  ;;  %v669_v21 = vadd.f32 %v1370_v17, %v657_v16  ;;  %v667_v22 = vadd.f32 %v1370_v17, %v655_v19  ;;  %v678_v34 = vld [vmem:[%s1911_s13 + $0x28] sm:$0xff]  ;;  %1373 = vrcp.f32 %v1642_v57 }
 0x132   : > { %v653_v23 = vld [vmem:[#allocation2 + $0x30] sm:$0xff]  ;;  %v673_v24 = vld [vmem:[%s1911_s13] sm:$0xff]  ;;  %v676_v35 = vld [vmem:[%s1911_s13 + $0x18] sm:$0xff] }
 0x133   : > { %v665_v25 = vadd.f32 %v1370_v17, %v653_v23  ;;  %v658_v26 = vld [vmem:[#allocation2 + $0x20] sm:$0xff]  ;;  %v656_v27 = vld [vmem:[#allocation2 + $0x10] sm:$0xff]  ;;  %v1961_v28 = vadd.f32 %v677_v18, %v669_v21  ;;  %v1963_v29 = vadd.f32 %v675_v20, %v667_v22  ;;  %v674_v37 = vld [vmem:[%s1911_s13 + $0x8] sm:$0xff] }
 0x134   : > { %v654_v30 = vld [vmem:[#allocation2] sm:$0xff]  ;;  %v670_v32 = vadd.f32 %v1370_v17, %v658_v26  ;;  %v668_v33 = vadd.f32 %v1370_v17, %v656_v27  ;;  %v660_v41 = vld [vmem:[#allocation2 + $0x38] sm:$0xff]  ;;  %v659_v42 = vld [vmem:[#allocation2 + $0x28] sm:$0xff] }
 0x135   : > { %v1965_v31 = vadd.f32 %v673_v24, %v665_v25  ;;  %697 = vadd.xlane.f32.xlu2 %v1961_v28  ;;  %693 = vadd.xlane.f32.xlu1 %v1963_v29  ;;  %v666_v36 = vadd.f32 %v1370_v17, %v654_v30  ;;  %v672_v43 = vadd.f32 %v1370_v17, %v660_v41  ;;  %v680_v44 = vld [vmem:[%s1911_s13 + $0x38] sm:$0xff]  ;;  %v679_v46 = vld [vmem:[%s1911_s13 + $0x30] sm:$0xff] }
 0x136   : > { %v1973_v38 = vadd.f32 %v678_v34, %v670_v32  ;;  %v1975_v39 = vadd.f32 %v676_v35, %v668_v33  ;;  %v671_v45 = vadd.f32 %v1370_v17, %v659_v42  ;;  %v722_v50 = vmul.f32 %v1963_v29, %v1963_v29 }
 0x137   : > { %689 = vadd.xlane.f32.xlu0 %v1965_v31  ;;  %v1977_v40 = vadd.f32 %v674_v37, %v666_v36  ;;  %v1984_v47 = vadd.f32 %v680_v44, %v672_v43  ;;  %v720_v48 = vmul.f32 %v1965_v31, %v1965_v31  ;;  %v724_v55 = vmul.f32 %v1961_v28, %v1961_v28  ;;  %v1374_v58 = vpop.eup %1373 }
 0x138   : > { %v1988_v49 = vadd.f32 %v679_v46, %v671_v45  ;;  %v723_v51 = vmul.f32 %v1975_v39, %v1975_v39  ;;  %v725_v53 = vmul.f32 %v1973_v38, %v1973_v38  ;;  %v706_v59 = vmul.f32 128.0, %v1374_v58 }
 0x139   : > { %v721_v52 = vmul.f32 %v1977_v40, %v1977_v40  ;;  %v727_v56 = vmul.f32 %v1984_v47, %v1984_v47  ;;  %vm710_vm0 = vweird.f32 %v1374_v58 }
 0x13a   : > { %v726_v54 = vmul.f32 %v1988_v49, %v1988_v49  ;;  %v707_v60 = vsub.f32 1.0, %v706_v59 }
 0x13c   : > { %v708_v0 = vmul.f32 %v1374_v58, %v707_v60 }
 0x13d   : > { %699 = vadd.xlane.f32.xlu2 %v1973_v38  ;;  %695 = vadd.xlane.f32.xlu1 %v1975_v39 }
 0x13e   : > { %v709_v1 = vadd.f32 %v1374_v58, %v708_v0 }
 0x13f   : > { %691 = vadd.xlane.f32.xlu0 %v1977_v40 }
 0x140   : > { %v2006_v5 = vsel %vm710_vm0, %v1374_v58, %v709_v1 }
 0x145   : > { %703 = vadd.xlane.f32.xlu1 %v1984_v47  ;;  %728 = vadd.xlane.f32.xlu2 %v720_v48 }
 0x147   : > { %701 = vadd.xlane.f32.xlu0 %v1988_v49 }
 0x14d   : > { %732 = vadd.xlane.f32.xlu1 %v722_v50  ;;  %734 = vadd.xlane.f32.xlu2 %v723_v51 }
 0x14f   : > { %730 = vadd.xlane.f32.xlu0 %v721_v52 }
 0x155   : > { %738 = vadd.xlane.f32.xlu1 %v725_v53  ;;  %740 = vadd.xlane.f32.xlu2 %v726_v54 }
 0x157   : > { %736 = vadd.xlane.f32.xlu0 %v724_v55 }
 0x15f   : > { %742 = vadd.xlane.f32.xlu0 %v727_v56 }
 0x1a8   : > { %v698_v61 = vpop.xlane.xlu2 %697  ;;  %v694_v62 = vpop.xlane.xlu1 %693 }
 0x1a9   : > { %v2015_v13 = vmul.f32 %v2006_v5, %v694_v62  ;;  %v2043_v37 = vmul.f32 %v2006_v5, %v698_v61  ;;  %v2065_v62 = vld [vmem:[%s2267_s18] ss:$0 sm:$0xff] }
 0x1aa   : > { %v690_v63 = vpop.xlane.xlu0 %689 }
 0x1ab   : > { %v2009_v6 = vmul.f32 %v2006_v5, %v690_v63  ;;  %v754_v19 = vmul.f32 %v2015_v13, %v2015_v13  ;;  %v756_v53 = vmul.f32 %v2043_v37, %v2043_v37 }
 0x1ad   : > { %v752_v9 = vmul.f32 %v2009_v6, %v2009_v6 }
 0x1b0   : > { %v700_v2 = vpop.xlane.xlu2 %699  ;;  %v696_v3 = vpop.xlane.xlu1 %695 }
 0x1b1   : > { %v2018_v14 = vmul.f32 %v2006_v5, %v696_v3  ;;  %v2033_v30 = vmul.f32 %v2006_v5, %v700_v2 }
 0x1b2   : > { %v692_v4 = vpop.xlane.xlu0 %691 }
 0x1b3   : > { %v2021_v16 = vmul.f32 %v2006_v5, %v692_v4  ;;  %v755_v20 = vmul.f32 %v2018_v14, %v2018_v14  ;;  %v757_v43 = vmul.f32 %v2033_v30, %v2033_v30 }
 0x1b5   : > { %v753_v24 = vmul.f32 %v2021_v16, %v2021_v16 }
 0x1b8   : > { %v704_v7 = vpop.xlane.xlu1 %703  ;;  %v729_v8 = vpop.xlane.xlu2 %728 }
 0x1b9   : > { %v744_v11 = vmul.f32 %v729_v8, %v2006_v5  ;;  %v2060_v58 = vmul.f32 %v2006_v5, %v704_v7 }
 0x1ba   : > { %v702_v10 = vpop.xlane.xlu0 %701 }
 0x1bb   : > { %v760_v12 = vsub.f32 %v744_v11, %v752_v9  ;;  %v2036_v34 = vmul.f32 %v2006_v5, %v702_v10  ;;  %v759_v9 = vmul.f32 %v2060_v58, %v2060_v58 }
 0x1bd   : > { %v768_v15 = vadd.f32 1e-05, %v760_v12  ;;  %v758_v48 = vmul.f32 %v2036_v34, %v2036_v34 }
 0x1bf   : > { %1375 = vrsqrt.f32 %v768_v15  ;;  %vm782_vm2 = vweird.f32 %v768_v15 }
 0x1c0   : > { %v733_v17 = vpop.xlane.xlu1 %732  ;;  %v735_v18 = vpop.xlane.xlu2 %734 }
 0x1c1   : > { %v746_v21 = vmul.f32 %v733_v17, %v2006_v5  ;;  %v747_v23 = vmul.f32 %v735_v18, %v2006_v5 }
 0x1c2   : > { %v731_v22 = vpop.xlane.xlu0 %730 }
 0x1c3   : > { %v745_v25 = vmul.f32 %v731_v22, %v2006_v5  ;;  %v762_v26 = vsub.f32 %v746_v21, %v754_v19  ;;  %v763_v27 = vsub.f32 %v747_v23, %v755_v20 }
 0x1c5   : > { %v761_v32 = vsub.f32 %v745_v25, %v753_v24  ;;  %v1376_v33 = vpop.eup %1375  ;;  %v2038_v35 = vadd.f32 1e-05, %v762_v26  ;;  %v2040_v36 = vadd.f32 1e-05, %v763_v27 }
 0x1c6   : > { %v777_v41 = vmul.f32 %v1376_v33, %v768_v15  ;;  %vm783_vm1 = vweird.f32 %v1376_v33  ;;  %v2082_v15 = vld [vmem:[%s2268_s27] ss:$0 sm:$0xff] }
 0x1c7   : > { %v2045_v42 = vadd.f32 1e-05, %v761_v32  ;;  %1377 = vrsqrt.f32 %v2038_v35  ;;  %vm784_vm3 = vmor %vm782_vm2, %vm783_vm1  ;;  %vm802_vm4 = vweird.f32 %v2038_v35  ;;  %vm812_vm5 = vweird.f32 %v2040_v36 }
 0x1c8   : > { %v778_v44 = vmul.f32 %v1376_v33, %v777_v41  ;;  %v739_v45 = vpop.xlane.xlu1 %738  ;;  %v741_v46 = vpop.xlane.xlu2 %740 }
 0x1c9   : > { %1379 = vrsqrt.f32 %v2045_v42  ;;  %v749_v50 = vmul.f32 %v739_v45, %v2006_v5  ;;  %v750_v52 = vmul.f32 %v741_v46, %v2006_v5  ;;  %vm792_vm6 = vweird.f32 %v2045_v42 }
 0x1ca   : > { %1381 = vrsqrt.f32 %v2040_v36  ;;  %v737_v51 = vpop.xlane.xlu0 %736  ;;  %v779_v54 = vmul.f32 0.5, %v778_v44 }
 0x1cb   : > { %v748_v55 = vmul.f32 %v737_v51, %v2006_v5  ;;  %v765_v56 = vsub.f32 %v749_v50, %v757_v43  ;;  %v766_v57 = vsub.f32 %v750_v52, %v758_v48 }
 0x1cc   : > { %v780_v59 = vsub.f32 1.5, %v779_v54 }
 0x1cd   : > { %v764_v60 = vsub.f32 %v748_v55, %v756_v53  ;;  %v1378_v61 = vpop.eup %1377  ;;  %v2067_v63 = vadd.f32 1e-05, %v765_v56  ;;  %v2072_v4 = vadd.f32 1e-05, %v766_v57 }
 0x1ce   : > { %v781_v1 = vmul.f32 %v1376_v33, %v780_v59  ;;  %v797_v2 = vmul.f32 %v1378_v61, %v2038_v35  ;;  %vm803_vm7 = vweird.f32 %v1378_v61 }
 0x1cf   : > { %v1380_v0 = vpop.eup %1379  ;;  %v2070_v3 = vadd.f32 1e-05, %v764_v60  ;;  %1383 = vrsqrt.f32 %v2067_v63  ;;  %vm832_vm10 = vweird.f32 %v2067_v63  ;;  %vm804_vm11 = vmor %vm802_vm4, %vm803_vm7  ;;  %vm842_vm4 = vweird.f32 %v2072_v4 }
 0x1d0   : > { %v1382_v7 = vpop.eup %1381  ;;  %v787_v8 = vmul.f32 %v1380_v0, %v2045_v42  ;;  %v785_v10 = vsel %vm784_vm3, %v1376_v33, %v781_v1  ;;  %v798_v11 = vmul.f32 %v1378_v61, %v797_v2  ;;  %vm793_vm8 = vweird.f32 %v1380_v0 }
 0x1d1   : > { %v807_v12 = vmul.f32 %v1382_v7, %v2040_v36  ;;  %v860_v17 = vmul.f32 %v2065_v62, %v785_v10  ;;  %1385 = vrsqrt.f32 %v2070_v3  ;;  %vm813_vm9 = vweird.f32 %v1382_v7  ;;  %vm794_vm13 = vmor %vm792_vm6, %vm793_vm8 }
 0x1d2   : > { %v788_v18 = vmul.f32 %v1380_v0, %v787_v8  ;;  %v743_v19 = vpop.xlane.xlu0 %742  ;;  %v799_v20 = vmul.f32 0.5, %v798_v11  ;;  %1387 = vrsqrt.f32 %v2072_v4  ;;  %vm814_vm14 = vmor %vm812_vm5, %vm813_vm9  ;;  %vm822_vm2 = vweird.f32 %v2070_v3 }
 0x1d3   : > { %v808_v21 = vmul.f32 %v1382_v7, %v807_v12  ;;  %v869_v22 = vmul.f32 %v860_v17, %v2009_v6  ;;  %v751_v24 = vmul.f32 %v743_v19, %v2006_v5  ;;  %v888_v33 = vmul.f32 %v860_v17, %v1965_v31 }
 0x1d4   : > { %v789_v23 = vmul.f32 0.5, %v788_v18  ;;  %v800_v25 = vsub.f32 1.5, %v799_v20 }
 0x1d5   : > { %v809_v26 = vmul.f32 0.5, %v808_v21  ;;  %v1384_v27 = vpop.eup %1383  ;;  %v880_v32 = vsub.f32 %v2082_v15, %v869_v22  ;;  %v767_v43 = vsub.f32 %v751_v24, %v759_v9 }
 0x1d6   : > { %v790_v41 = vsub.f32 1.5, %v789_v23  ;;  %v801_v44 = vmul.f32 %v1378_v61, %v800_v25  ;;  %v827_v6 = vmul.f32 %v1384_v27, %v2067_v63  ;;  %vm833_vm12 = vweird.f32 %v1384_v27 }
 0x1d7   : > { %v810_v45 = vsub.f32 1.5, %v809_v26  ;;  %v1386_v5 = vpop.eup %1385  ;;  %v896_v46 = vadd.f32 %v888_v33, %v880_v32  ;;  %v2099_v50 = vadd.f32 1e-05, %v767_v43  ;;  %vm834_vm1 = vmor %vm832_vm10, %vm833_vm12 }
 0x1d8   : > { %v791_v48 = vmul.f32 %v1380_v0, %v790_v41  ;;  %v1388_v31 = vpop.eup %1387  ;;  %v805_v51 = vsel %vm804_vm11, %v1378_v61, %v801_v44  ;;  %v828_v53 = vmul.f32 %v1384_v27, %v827_v6  ;;  %v817_v54 = vmul.f32 %v1386_v5, %v2070_v3 }
 0x1d9   : > { %v811_v52 = vmul.f32 %v1382_v7, %v810_v45  ;;  %904 = vst [vmem:[%s1950_s23] sm:$0xff] %v896_v46  ;;  %v862_v55 = vmul.f32 %v2065_v62, %v805_v51  ;;  %vm823_vm15 = vweird.f32 %v1386_v5  ;;  %v837_v35 = vmul.f32 %v1388_v31, %v2072_v4 }
 0x1da   : > { %v795_v56 = vsel %vm794_vm13, %v1380_v0, %v791_v48  ;;  %v829_v42 = vmul.f32 0.5, %v828_v53  ;;  %v818_v60 = vmul.f32 %v1386_v5, %v817_v54  ;;  %vm843_vm0 = vweird.f32 %v1388_v31  ;;  %vm824_vm3 = vmor %vm822_vm2, %vm823_vm15 }
 0x1db   : > { %v861_v57 = vmul.f32 %v2065_v62, %v795_v56  ;;  %v815_v59 = vsel %vm814_vm14, %v1382_v7, %v811_v52  ;;  %v871_v61 = vmul.f32 %v862_v55, %v2015_v13  ;;  %v890_v1 = vmul.f32 %v862_v55, %v1963_v29  ;;  %vm844_vm5 = vmor %vm842_vm4, %vm843_vm0 }
 0x1dc   : > { %v863_v2 = vmul.f32 %v2065_v62, %v815_v59  ;;  %v838_v8 = vmul.f32 %v1388_v31, %v837_v35  ;;  %v830_v9 = vsub.f32 1.5, %v829_v42  ;;  %v819_v10 = vmul.f32 0.5, %v818_v60 }
 0x1dd   : > { %v870_v0 = vmul.f32 %v861_v57, %v2021_v16  ;;  %v889_v36 = vmul.f32 %v861_v57, %v1977_v40  ;;  %v882_v11 = vsub.f32 %v2082_v15, %v871_v61  ;;  %1389 = vrsqrt.f32 %v2099_v50 }
 0x1de   : > { %v872_v12 = vmul.f32 %v863_v2, %v2018_v14  ;;  %v891_v7 = vmul.f32 %v863_v2, %v1975_v39  ;;  %v839_v17 = vmul.f32 0.5, %v838_v8  ;;  %v831_v29 = vmul.f32 %v1384_v27, %v830_v9 }
 0x1df   : > { %v881_v13 = vsub.f32 %v2082_v15, %v870_v0  ;;  %v820_v18 = vsub.f32 1.5, %v819_v10  ;;  %v898_v19 = vadd.f32 %v890_v1, %v882_v11  ;;  %vm852_vm7 = vweird.f32 %v2099_v50 }
 0x1e0   : > { %v883_v16 = vsub.f32 %v2082_v15, %v872_v12  ;;  %v840_v40 = vsub.f32 1.5, %v839_v17  ;;  %v835_v39 = vsel %vm834_vm1, %v1384_v27, %v831_v29 }
 0x1e1   : > { %v897_v14 = vadd.f32 %v889_v36, %v881_v13  ;;  %v821_v20 = vmul.f32 %v1386_v5, %v820_v18  ;;  %906 = vst [vmem:[%s1950_s23 + $0x10] sm:$0xff] %v898_v19  ;;  %v865_v22 = vmul.f32 %v2065_v62, %v835_v39 }
 0x1e2   : > { %v899_v21 = vadd.f32 %v891_v7, %v883_v16  ;;  %v841_v23 = vmul.f32 %v1388_v31, %v840_v40 }
 0x1e3   : > { %905 = vst [vmem:[%s1950_s23 + $0x8] sm:$0xff] %v897_v14  ;;  %v825_v63 = vsel %vm824_vm3, %v1386_v5, %v821_v20  ;;  %v874_v24 = vmul.f32 %v865_v22, %v2033_v30  ;;  %v1390_v27 = vpop.eup %1389  ;;  %v893_v4 = vmul.f32 %v865_v22, %v1973_v38 }
 0x1e4   : > { %907 = vst [vmem:[%s1950_s23 + $0x18] sm:$0xff] %v899_v21  ;;  %v864_v25 = vmul.f32 %v2065_v62, %v825_v63  ;;  %v845_v3 = vsel %vm844_vm5, %v1388_v31, %v841_v23  ;;  %v847_v43 = vmul.f32 %v1390_v27, %v2099_v50  ;;  %vm853_vm6 = vweird.f32 %v1390_v27 }
 0x1e5   : > { %v866_v26 = vmul.f32 %v2065_v62, %v845_v3  ;;  %v885_v32 = vsub.f32 %v2082_v15, %v874_v24  ;;  %vm854_vm8 = vmor %vm852_vm7, %vm853_vm6 }
 0x1e6   : > { %v873_v33 = vmul.f32 %v864_v25, %v2043_v37  ;;  %v892_v45 = vmul.f32 %v864_v25, %v1961_v28  ;;  %v848_v46 = vmul.f32 %v1390_v27, %v847_v43 }
 0x1e7   : > { %v875_v41 = vmul.f32 %v866_v26, %v2036_v34  ;;  %v901_v30 = vadd.f32 %v893_v4, %v885_v32  ;;  %v894_v5 = vmul.f32 %v866_v26, %v1988_v49 }
 0x1e8   : > { %v884_v44 = vsub.f32 %v2082_v15, %v873_v33  ;;  %v849_v31 = vmul.f32 0.5, %v848_v46 }
 0x1e9   : > { %v886_v6 = vsub.f32 %v2082_v15, %v875_v41  ;;  %909 = vst [vmem:[%s1950_s23 + $0x28] sm:$0xff] %v901_v30 }
 0x1ea   : > { %v900_v48 = vadd.f32 %v892_v45, %v884_v44  ;;  %v850_v34 = vsub.f32 1.5, %v849_v31 }
 0x1eb   : > { %v902_v38 = vadd.f32 %v894_v5, %v886_v6 }
 0x1ec   : > { %908 = vst [vmem:[%s1950_s23 + $0x20] sm:$0xff] %v900_v48  ;;  %v851_v37 = vmul.f32 %v1390_v27, %v850_v34 }
 0x1ed   : > { %910 = vst [vmem:[%s1950_s23 + $0x30] sm:$0xff] %v902_v38 }
 0x1ee   : > { %v855_v51 = vsel %vm854_vm8, %v1390_v27, %v851_v37 }
 0x1ef   : > { %v867_v28 = vmul.f32 %v2065_v62, %v855_v51 }
 0x1f1   : > { %v876_v52 = vmul.f32 %v867_v28, %v2060_v58  ;;  %v895_v53 = vmul.f32 %v867_v28, %v1984_v47 }
 0x1f3   : > { %v887_v49 = vsub.f32 %v2082_v15, %v876_v52 }
 0x1f5   : > { %v903_v54 = vadd.f32 %v895_v53, %v887_v49 }
 0x1f7   : > { %911 = vst [vmem:[%s1950_s23 + $0x38] sm:$0xff] %v903_v54 }
 0x1f8 PF: > { %s2269_s4 = sld [smem:[#allocation17_spill]]  ;;  %s925_s26 = sshll.u32 %s1950_s23, 4  ;;  %s926_s26 = int_to_ptr.vmem [resolvable:$true] %s925_s26 }
 0x1f9   : > { %s2270_s14 = sld [smem:[#allocation29_spill]]  ;;  %s913_s16 = scalar_lea.sflag [#allocation5], %s328_s9 }
 0x1fe   : > { %s1209_s24 = sshll.u32 %s2269_s4, 6 }
 0x1ff   : > { %s924_s0 = scalar_lea.hbm %s2270_s14, %s1209_s24  ;;  %s1501_s20 = scalar_lea.hbm %s2270_s14, 128 }
 0x200   : > { %s927_s6 = sshll.u32 %s924_s0, 4  ;;  %s928_s6 = int_to_ptr.hbm [resolvable:$true] %s927_s6 }
 0x201   : > { %s1495_s19 = sshra.s32 %s928_s6, 4  ;;  %s1496_s19 = int_to_ptr.hbm [resolvable:$true] %s1495_s19 }
 0x202   : > { %s1497_s5 = scalar_lea.hbm %s1496_s19, 64  ;;  %p1502_p13 = scmp.lt.s32.totalorder %s1496_s19, %s2270_s14 }
 0x203   : > { %p1498_p3 = scmp.ne.s32.totalorder %s1496_s19, %s1497_s5  ;;  %p1503_p0 = scmp.lt.s32.totalorder %s1501_s20, %s1497_s5 }
 0x205   : > { %p1499_p7 = pnand %p1498_p3, %p1871_p9  ;;  %p1504_p4 = por %p1503_p0, %p1502_p13 }
 0x207   : > { %p1500_p12 = pneg %p1499_p7 }
 0x209   : > { %p1505_p5 = pnand %p1504_p4, %p1500_p12 }
 0x20b   : > { %1508 = shalt.err (!%p1505_p5)
}
 0x20c   : > { %s1643_s9 = smov 128   ;;  %s1644_s23 = smov 8  }
 0x20d   : > { %1232 = dma.vmem_to_hbm [thread:$0]  (%p1871_p9), %s926_s26, 1024, %s928_s6, %s913_s16, %s1643_s9, %s1643_s9, %s1644_s23  }
 0x20e PF: > { %p1249_p6 = scmp.ge.s32.totalorder %s1635_s10, 2  ;;  %s942_s18 = sand.u32 1, %s1583_s21  }
 0x20f   : > { %s943_s29 = scalar_lea.sflag [#allocation5], %s942_s18 }
 0x210   : > { %p1245_p2 = pnand %p1249_p6, %p1875_p1 }
 0x212   : > { %p1246_p8 = pneg %p1245_p2 }
 0x214   : > { %1578 = dma.done.wait (%p1246_p8), %s943_s29, 1024  }
 0x215   : > { %1580 = vsyncadd (%p1246_p8), %s943_s29, 4294966272  ;;  %s25_s10 = sadd.s32 1, %s1635_s10   ;;  %s2272_s17 = sld [smem:[#allocation14_spill]] }
 0x216   : > { %p2177_p10 = scmp.ge.s32.totalorder %s25_s10, 6   ;;  %s2273_s23 = sld [smem:[#allocation24_spill]] }
 0x217   : > { %s2274_s27 = sld [smem:[#allocation15_spill]]  ;;  %s2282_s21 = smov %s1587_s22 }
 0x218   : > { %s2275_s26 = sld [smem:[#allocation22_spill]]  ;;  %s2284_s24 = smov %s1599_s25 }
 0x219   : > { %s2276_s4 = sld [smem:[#allocation16_spill]] }
 0x21a   : > { %s2277_s29 = sld [smem:[#allocation23_spill]] }
 0x21b   : > { %s2278_s30 = sld [smem:[#allocation18_spill]]  ;;  %s2283_s22 = smov %s2272_s17 }
 0x21c   : > { %s2279_s7 = sld [smem:[#allocation19_spill]]  ;;  %24 = sbr.rel (!%p2177_p10) target bundleno = 18 (0x12), region = 125 }
 0x21d   : > { %s2280_s8 = sld [smem:[#allocation20_spill]]  ;;  %s2285_s25 = smov %s2274_s27 }
 0x21e   : > { %s2281_s9 = sld [smem:[#allocation21_spill]]  ;;  %s2286_s27 = smov %s1611_s28 }
 0x21f   : > { %s2287_s28 = smov %s2276_s4 }
 0x221   :  { %949 = vsyncpa [#allocation4], 1 }
 0x222   :  { %951 = vsyncpa [#allocation4 + $0x1], 1 }
 0x223   :  { %952 = vsyncpa [#allocation7], 1 }
 0x224   :  { %954 = vsyncpa [#allocation7 + $0x1], 1 }
 0x225   :  { %955 = vsyncpa [#allocation5], 1 }
 0x226   :  { %957 = vsyncpa [#allocation5 + $0x1], 1 }

</bundles_post_ra>
